<compile_context>
chip_gen: v7x
topology: tpu7x:2x2x1
jax: 0.10.0
libtpu: 0.0.40
codegen_flags: <defaults>
</compile_context>

<pallas_src>
import math
import functools

import jax
import jax.numpy as jnp
from jax.experimental import pallas as pl
from jax.experimental.pallas import tpu as pltpu

DIM = 32
N_HEADS = 4
HEAD_DIM = DIM // N_HEADS
EPS = 1e-5  # torch.nn.LayerNorm default


def _layernorm(x, gamma, beta):
    mu = jnp.mean(x, axis=-1, keepdims=True)
    var = jnp.mean((x - mu) ** 2, axis=-1, keepdims=True)
    return (x - mu) * jax.lax.rsqrt(var + EPS) * gamma + beta


def _erf_approx(x):
    # Abramowitz & Stegun 7.1.26 rational approximation, |err| < 1.5e-7 (f32).
    # Elementwise VPU/EUP ops only (exp / mul / add / abs / select).
    a1, a2, a3, a4, a5 = 0.254829592, -0.284496736, 1.421413741, -1.453152027, 1.061405429
    p = 0.3275911
    s = jnp.where(x >= 0.0, 1.0, -1.0)
    ax = jnp.abs(x)
    t = 1.0 / (1.0 + p * ax)
    poly = ((((a5 * t + a4) * t + a3) * t + a2) * t + a1) * t
    return s * (1.0 - poly * jnp.exp(-ax * ax))


def _gelu_exact(x):
    # nn.GELU() default = exact erf-based GELU.
    return 0.5 * x * (1.0 + _erf_approx(x * (1.0 / math.sqrt(2.0))))


def encoder_block_kernel(
    x_ref,                       # (B*T, C)
    ln1_g_ref, ln1_b_ref,        # (1, C)
    wqkv_ref, bqkv_ref,          # (C, 3C), (1, 3C)  fused q/k/v, scale folded into q
    wo_ref, bo_ref,              # (C, C), (1, C)
    ln2_g_ref, ln2_b_ref,        # (1, C)
    w1_ref, b1_ref,              # (C, 4C), (1, 4C)
    w2_ref, b2_ref,              # (4C, C), (1, C)
    o_ref,                       # (B*T, C)
    *, batch, seq,
):
    x = x_ref[...]                                  # (B*T, C)
    C = x.shape[-1]

    # ---- x = ln_1(x) ----
    x1 = _layernorm(x, ln1_g_ref[...], ln1_b_ref[...])

    # ---- fused (and pre-scaled) QKV projection: one (B*T, C)@(C, 3C) dot ----
    qkv = jnp.dot(x1, wqkv_ref[...], preferred_element_type=jnp.float32) + bqkv_ref[...]
    qkv3 = qkv.reshape(batch, seq, 3 * C)           # row-axis split only (cheap)

    # ---- multi-head self-attention (mask=None, dropout=0) ----
    heads = []
    for h in range(N_HEADS):                        # static loop, 4 iterations
        lo = h * HEAD_DIM
        qh = qkv3[:, :, lo:lo + HEAD_DIM]                       # (B, T, D), pre-scaled
        kh = qkv3[:, :, C + lo:C + lo + HEAD_DIM]               # (B, T, D)
        vh = qkv3[:, :, 2 * C + lo:2 * C + lo + HEAD_DIM]       # (B, T, D)

        s = jnp.einsum("bqd,bkd->bqk", qh, kh,
                       preferred_element_type=jnp.float32)      # (B, T, T)
        s = s - jnp.max(s, axis=-1, keepdims=True)
        p = jnp.exp(s)
        p = p * pl.reciprocal(jnp.sum(p, axis=-1, keepdims=True))   # exact softmax
        heads.append(jnp.einsum("bqk,bkd->bqd", p, vh,
                                preferred_element_type=jnp.float32))  # (B, T, D)

    # concat(heads) along lanes == torch .permute().view(b,t,c); ONE out-proj dot
    ctx = jnp.concatenate(heads, axis=-1).reshape(batch * seq, C)     # (B*T, C)
    attn = jnp.dot(ctx, wo_ref[...], preferred_element_type=jnp.float32) + bo_ref[...]

    # ---- residual: x = x1 + attn(x1) ----
    x2 = x1 + attn

    # ---- x = ln_2(x); x = x + ffd(x) ----
    x3 = _layernorm(x2, ln2_g_ref[...], ln2_b_ref[...])
    h1 = jnp.dot(x3, w1_ref[...], preferred_element_type=jnp.float32) + b1_ref[...]
    h1 = _gelu_exact(h1)
    ff = jnp.dot(h1, w2_ref[...], preferred_element_type=jnp.float32) + b2_ref[...]

    o_ref[...] = (x3 + ff).astype(o_ref.dtype)


@jax.jit
def encoder_block(x, ln1_g, ln1_b, wq, bq, wk, bk, wv, bv, wo, bo,
                  ln2_g, ln2_b, w1, b1, w2, b2):
    B, T, C = x.shape
    H, D = N_HEADS, C // N_HEADS
    scale = D ** (-0.5)

    # Fuse q/k/v weights & biases outside the kernel (cheap XLA concat) and
    # fold the attention scale into the Q columns (weights AND bias).
    wqkv = jnp.concatenate([wq * scale, wk, wv], axis=1)     # (C, 3C)
    bqkv = jnp.concatenate([bq * scale, bk, bv], axis=1)     # (1, 3C)
    x2d = x.reshape(B * T, C)                                # free row-major view

    M = B * T
    flops = int(2 * M * C * 3 * C            # qkv projection
                + 2 * B * H * T * T * D * 2  # scores + context
                + 2 * M * C * C              # out projection
                + 2 * M * C * 4 * C * 2      # ffn
                + 20 * M * C)                # layernorms / residuals (rough)
    transcendentals = int(B * H * T * T + M * 4 * C + 2 * M)
    bytes_accessed = int(4 * (2 * M * C                       # x in + out
                              + C * 3 * C + 3 * C             # wqkv, bqkv
                              + C * C + C                     # wo, bo
                              + C * 4 * C + 4 * C             # w1, b1
                              + 4 * C * C + C                 # w2, b2
                              + 4 * C))                       # ln params

    vmem_spec = pl.BlockSpec(memory_space=pltpu.MemorySpace.VMEM)
    kernel = functools.partial(encoder_block_kernel, batch=B, seq=T)
    out2d = pl.pallas_call(
        kernel,
        out_shape=jax.ShapeDtypeStruct((B * T, C), x.dtype),
        in_specs=[vmem_spec] * 13,
        out_specs=vmem_spec,
        cost_estimate=pl.CostEstimate(flops=flops,
                                      transcendentals=transcendentals,
                                      bytes_accessed=bytes_accessed),
        # No grid: single invocation, whole arrays resident in VMEM.
        # TODO(synk): on v7x with larger B*T, add grid=(B,) with
        # dimension_semantics=("parallel",) to use both TensorCores.
    )(x2d, ln1_g, ln1_b, wqkv, bqkv, wo, bo, ln2_g, ln2_b, w1, b1, w2, b2)
    return out2d.reshape(B, T, C)


def reference(x, ln1_g, ln1_b, wq, bq, wk, bk, wv, bv, wo, bo,
              ln2_g, ln2_b, w1, b1, w2, b2):
    # Pure-JAX reference mirroring the PyTorch forward.
    def ln(z, g, b):
        mu = z.mean(-1, keepdims=True)
        var = ((z - mu) ** 2).mean(-1, keepdims=True)
        return (z - mu) / jnp.sqrt(var + EPS) * g[0] + b[0]

    B, T, C = x.shape
    x1 = ln(x, ln1_g, ln1_b)
    q = x1 @ wq + bq[0]
    k = x1 @ wk + bk[0]
    v = x1 @ wv + bv[0]
    qh = q.reshape(B, T, N_HEADS, HEAD_DIM).transpose(0, 2, 1, 3)
    kh = k.reshape(B, T, N_HEADS, HEAD_DIM).transpose(0, 2, 1, 3)
    vh = v.reshape(B, T, N_HEADS, HEAD_DIM).transpose(0, 2, 1, 3)
    s = jnp.einsum("bhtd,bhsd->bhts", qh, kh) * (HEAD_DIM ** -0.5)
    p = jax.nn.softmax(s, axis=-1)
    a = jnp.einsum("bhts,bhsd->bhtd", p, vh).transpose(0, 2, 1, 3).reshape(B, T, C)
    a = a @ wo + bo[0]
    x2 = x1 + a
    x3 = ln(x2, ln2_g, ln2_b)
    h = jax.nn.gelu(x3 @ w1 + b1[0], approximate=False)
    ff = h @ w2 + b2[0]
    return x3 + ff


def _init_linear(key, fan_in, fan_out):
    kw, kb = jax.random.split(key)
    bound = 1.0 / math.sqrt(fan_in)
    W = jax.random.uniform(kw, (fan_in, fan_out), jnp.float32, -bound, bound)
    b = jax.random.uniform(kb, (1, fan_out), jnp.float32, -bound, bound)
    return W, b


if __name__ == "__main__":
    B, T, C = 2, 8, DIM
    key = jax.random.PRNGKey(0)
    kx, kq, kk, kv, ko, k1, k2 = jax.random.split(key, 7)

    x = jax.random.normal(kx, (B, T, C), jnp.float32)

    ln1_g = jnp.ones((1, C), jnp.float32)
    ln1_b = jnp.zeros((1, C), jnp.float32)
    ln2_g = jnp.ones((1, C), jnp.float32)
    ln2_b = jnp.zeros((1, C), jnp.float32)
    wq, bq = _init_linear(kq, C, C)
    wk, bk = _init_linear(kk, C, C)
    wv, bv = _init_linear(kv, C, C)
    wo, bo = _init_linear(ko, C, C)
    w1, b1 = _init_linear(k1, C, 4 * C)
    w2, b2 = _init_linear(k2, 4 * C, C)

    args = (x, ln1_g, ln1_b, wq, bq, wk, bk, wv, bv, wo, bo,
            ln2_g, ln2_b, w1, b1, w2, b2)

    out = encoder_block(*args)
    out = jax.block_until_ready(out)

    ref = reference(*args)
    assert out.shape == (B, T, C)
    assert jnp.allclose(out, ref, rtol=1e-4, atol=1e-4), (
        float(jnp.max(jnp.abs(out - ref))))
    print("KERNEL_OK")
</pallas_src>

<mosaic_0001>
module attributes {stable_mosaic.version = 11 : i64} {
  func.func @encoder_block_kernel(%arg0: memref<16x32xf32, #tpu.memory_space<vmem>>, %arg1: memref<1x32xf32, #tpu.memory_space<vmem>>, %arg2: memref<1x32xf32, #tpu.memory_space<vmem>>, %arg3: memref<32x96xf32, #tpu.memory_space<vmem>>, %arg4: memref<1x96xf32, #tpu.memory_space<vmem>>, %arg5: memref<32x32xf32, #tpu.memory_space<vmem>>, %arg6: memref<1x32xf32, #tpu.memory_space<vmem>>, %arg7: memref<1x32xf32, #tpu.memory_space<vmem>>, %arg8: memref<1x32xf32, #tpu.memory_space<vmem>>, %arg9: memref<32x128xf32, #tpu.memory_space<vmem>>, %arg10: memref<1x128xf32, #tpu.memory_space<vmem>>, %arg11: memref<128x32xf32, #tpu.memory_space<vmem>>, %arg12: memref<1x32xf32, #tpu.memory_space<vmem>>, %arg13: memref<16x32xf32, #tpu.memory_space<vmem>>) attributes {dimension_semantics = [], scalar_prefetch = 0 : i64, scratch_operands = 0 : i64, tpu.core_type = #tpu.core_type<tc>} {
    %c0 = arith.constant 0 : index
    %c0_0 = arith.constant 0 : index
    %0 = vector.load %arg0[%c0, %c0_0] : memref<16x32xf32, #tpu.memory_space<vmem>>, vector<16x32xf32>
    %c0_1 = arith.constant 0 : index
    %c0_2 = arith.constant 0 : index
    %1 = vector.load %arg1[%c0_1, %c0_2] : memref<1x32xf32, #tpu.memory_space<vmem>>, vector<1x32xf32>
    %c0_3 = arith.constant 0 : index
    %c0_4 = arith.constant 0 : index
    %2 = vector.load %arg2[%c0_3, %c0_4] : memref<1x32xf32, #tpu.memory_space<vmem>>, vector<1x32xf32>
    %cst = arith.constant dense<0.000000e+00> : vector<16xf32>
    %3 = vector.multi_reduction <add>, %0, %cst [1] : vector<16x32xf32> to vector<16xf32>
    %4 = vector.shape_cast %3 : vector<16xf32> to vector<16x1xf32>
    %cst_5 = arith.constant 3.200000e+01 : f32
    %5 = vector.broadcast %cst_5 : f32 to vector<16x1xf32>
    %6 = arith.divf %4, %5 : vector<16x1xf32>
    %7 = vector.broadcast %6 : vector<16x1xf32> to vector<16x32xf32>
    %8 = arith.subf %0, %7 : vector<16x32xf32>
    %9 = arith.mulf %8, %8 : vector<16x32xf32>
    %cst_6 = arith.constant dense<0.000000e+00> : vector<16xf32>
    %10 = vector.multi_reduction <add>, %9, %cst_6 [1] : vector<16x32xf32> to vector<16xf32>
    %11 = vector.shape_cast %10 : vector<16xf32> to vector<16x1xf32>
    %cst_7 = arith.constant 3.200000e+01 : f32
    %12 = vector.broadcast %cst_7 : f32 to vector<16x1xf32>
    %13 = arith.divf %11, %12 : vector<16x1xf32>
    %14 = vector.broadcast %6 : vector<16x1xf32> to vector<16x32xf32>
    %15 = arith.subf %0, %14 : vector<16x32xf32>
    %cst_8 = arith.constant 9.99999974E-6 : f32
    %16 = vector.broadcast %cst_8 : f32 to vector<16x1xf32>
    %17 = arith.addf %13, %16 : vector<16x1xf32>
    %18 = math.rsqrt %17 : vector<16x1xf32>
    %19 = vector.broadcast %18 : vector<16x1xf32> to vector<16x32xf32>
    %20 = arith.mulf %15, %19 : vector<16x32xf32>
    %21 = vector.broadcast %1 : vector<1x32xf32> to vector<16x32xf32>
    %22 = arith.mulf %20, %21 : vector<16x32xf32>
    %23 = vector.broadcast %2 : vector<1x32xf32> to vector<16x32xf32>
    %24 = arith.addf %22, %23 : vector<16x32xf32>
    %c0_9 = arith.constant 0 : index
    %c0_10 = arith.constant 0 : index
    %25 = vector.load %arg3[%c0_9, %c0_10] : memref<32x96xf32, #tpu.memory_space<vmem>>, vector<32x96xf32>
    %cst_11 = arith.constant dense<0.000000e+00> : vector<16x96xf32>
    %26 = tpu.matmul %24, %25, %cst_11 {dimension_numbers = #tpu.dot_dimension_numbers<[1], [0], [0], [1], [0, 0, 1, 1], [], []>} : vector<16x32xf32>, vector<32x96xf32>, vector<16x96xf32> -> vector<16x96xf32>
    %c0_12 = arith.constant 0 : index
    %c0_13 = arith.constant 0 : index
    %27 = vector.load %arg4[%c0_12, %c0_13] : memref<1x96xf32, #tpu.memory_space<vmem>>, vector<1x96xf32>
    %28 = vector.broadcast %27 : vector<1x96xf32> to vector<16x96xf32>
    %29 = arith.addf %26, %28 : vector<16x96xf32>
    %30 = vector.shape_cast %29 : vector<16x96xf32> to vector<2x8x96xf32>
    %31 = vector.extract_strided_slice %30 {offsets = [0, 0, 0], sizes = [2, 8, 8], strides = [1, 1, 1]} : vector<2x8x96xf32> to vector<2x8x8xf32>
    %32 = vector.extract_strided_slice %30 {offsets = [0, 0, 32], sizes = [2, 8, 8], strides = [1, 1, 1]} : vector<2x8x96xf32> to vector<2x8x8xf32>
    %33 = vector.extract_strided_slice %30 {offsets = [0, 0, 64], sizes = [2, 8, 8], strides = [1, 1, 1]} : vector<2x8x96xf32> to vector<2x8x8xf32>
    "tpu.trace_start"() <{level = 10 : i32, message = "bqd,bkd->bqk"}> : () -> ()
    %cst_14 = arith.constant dense<0.000000e+00> : vector<2x8x8xf32>
    %34 = tpu.matmul %31, %32, %cst_14 {dimension_numbers = #tpu.dot_dimension_numbers<[2], [2], [1], [1], [0, 0, 0, 1, 1, 1], [0], [0]>} : vector<2x8x8xf32>, vector<2x8x8xf32>, vector<2x8x8xf32> -> vector<2x8x8xf32>
    "tpu.trace_stop"() : () -> ()
    %cst_15 = arith.constant dense<0xFF800000> : vector<2x8xf32>
    %35 = vector.multi_reduction <maximumf>, %34, %cst_15 [2] : vector<2x8x8xf32> to vector<2x8xf32>
    %36 = vector.shape_cast %35 : vector<2x8xf32> to vector<2x8x1xf32>
    %37 = vector.broadcast %36 : vector<2x8x1xf32> to vector<2x8x8xf32>
    %38 = arith.subf %34, %37 : vector<2x8x8xf32>
    %39 = math.exp %38 : vector<2x8x8xf32>
    %cst_16 = arith.constant dense<0.000000e+00> : vector<2x8xf32>
    %40 = vector.multi_reduction <add>, %39, %cst_16 [2] : vector<2x8x8xf32> to vector<2x8xf32>
    %41 = vector.shape_cast %40 : vector<2x8xf32> to vector<2x8x1xf32>
    %42 = tpu.reciprocal %41 : vector<2x8x1xf32> -> vector<2x8x1xf32>
    %43 = vector.broadcast %42 : vector<2x8x1xf32> to vector<2x8x8xf32>
    %44 = arith.mulf %39, %43 : vector<2x8x8xf32>
    "tpu.trace_start"() <{level = 10 : i32, message = "bqk,bkd->bqd"}> : () -> ()
    %cst_17 = arith.constant dense<0.000000e+00> : vector<2x8x8xf32>
    %45 = tpu.matmul %44, %33, %cst_17 {dimension_numbers = #tpu.dot_dimension_numbers<[2], [1], [1], [2], [0, 0, 0, 1, 1, 2], [0], [0]>} : vector<2x8x8xf32>, vector<2x8x8xf32>, vector<2x8x8xf32> -> vector<2x8x8xf32>
    "tpu.trace_stop"() : () -> ()
    %46 = vector.extract_strided_slice %30 {offsets = [0, 0, 8], sizes = [2, 8, 8], strides = [1, 1, 1]} : vector<2x8x96xf32> to vector<2x8x8xf32>
    %47 = vector.extract_strided_slice %30 {offsets = [0, 0, 40], sizes = [2, 8, 8], strides = [1, 1, 1]} : vector<2x8x96xf32> to vector<2x8x8xf32>
    %48 = vector.extract_strided_slice %30 {offsets = [0, 0, 72], sizes = [2, 8, 8], strides = [1, 1, 1]} : vector<2x8x96xf32> to vector<2x8x8xf32>
    "tpu.trace_start"() <{level = 10 : i32, message = "bqd,bkd->bqk"}> : () -> ()
    %cst_18 = arith.constant dense<0.000000e+00> : vector<2x8x8xf32>
    %49 = tpu.matmul %46, %47, %cst_18 {dimension_numbers = #tpu.dot_dimension_numbers<[2], [2], [1], [1], [0, 0, 0, 1, 1, 1], [0], [0]>} : vector<2x8x8xf32>, vector<2x8x8xf32>, vector<2x8x8xf32> -> vector<2x8x8xf32>
    "tpu.trace_stop"() : () -> ()
    %cst_19 = arith.constant dense<0xFF800000> : vector<2x8xf32>
    %50 = vector.multi_reduction <maximumf>, %49, %cst_19 [2] : vector<2x8x8xf32> to vector<2x8xf32>
    %51 = vector.shape_cast %50 : vector<2x8xf32> to vector<2x8x1xf32>
    %52 = vector.broadcast %51 : vector<2x8x1xf32> to vector<2x8x8xf32>
    %53 = arith.subf %49, %52 : vector<2x8x8xf32>
    %54 = math.exp %53 : vector<2x8x8xf32>
    %cst_20 = arith.constant dense<0.000000e+00> : vector<2x8xf32>
    %55 = vector.multi_reduction <add>, %54, %cst_20 [2] : vector<2x8x8xf32> to vector<2x8xf32>
    %56 = vector.shape_cast %55 : vector<2x8xf32> to vector<2x8x1xf32>
    %57 = tpu.reciprocal %56 : vector<2x8x1xf32> -> vector<2x8x1xf32>
    %58 = vector.broadcast %57 : vector<2x8x1xf32> to vector<2x8x8xf32>
    %59 = arith.mulf %54, %58 : vector<2x8x8xf32>
    "tpu.trace_start"() <{level = 10 : i32, message = "bqk,bkd->bqd"}> : () -> ()
    %cst_21 = arith.constant dense<0.000000e+00> : vector<2x8x8xf32>
    %60 = tpu.matmul %59, %48, %cst_21 {dimension_numbers = #tpu.dot_dimension_numbers<[2], [1], [1], [2], [0, 0, 0, 1, 1, 2], [0], [0]>} : vector<2x8x8xf32>, vector<2x8x8xf32>, vector<2x8x8xf32> -> vector<2x8x8xf32>
    "tpu.trace_stop"() : () -> ()
    %61 = vector.extract_strided_slice %30 {offsets = [0, 0, 16], sizes = [2, 8, 8], strides = [1, 1, 1]} : vector<2x8x96xf32> to vector<2x8x8xf32>
    %62 = vector.extract_strided_slice %30 {offsets = [0, 0, 48], sizes = [2, 8, 8], strides = [1, 1, 1]} : vector<2x8x96xf32> to vector<2x8x8xf32>
    %63 = vector.extract_strided_slice %30 {offsets = [0, 0, 80], sizes = [2, 8, 8], strides = [1, 1, 1]} : vector<2x8x96xf32> to vector<2x8x8xf32>
    "tpu.trace_start"() <{level = 10 : i32, message = "bqd,bkd->bqk"}> : () -> ()
    %cst_22 = arith.constant dense<0.000000e+00> : vector<2x8x8xf32>
    %64 = tpu.matmul %61, %62, %cst_22 {dimension_numbers = #tpu.dot_dimension_numbers<[2], [2], [1], [1], [0, 0, 0, 1, 1, 1], [0], [0]>} : vector<2x8x8xf32>, vector<2x8x8xf32>, vector<2x8x8xf32> -> vector<2x8x8xf32>
    "tpu.trace_stop"() : () -> ()
    %cst_23 = arith.constant dense<0xFF800000> : vector<2x8xf32>
    %65 = vector.multi_reduction <maximumf>, %64, %cst_23 [2] : vector<2x8x8xf32> to vector<2x8xf32>
    %66 = vector.shape_cast %65 : vector<2x8xf32> to vector<2x8x1xf32>
    %67 = vector.broadcast %66 : vector<2x8x1xf32> to vector<2x8x8xf32>
    %68 = arith.subf %64, %67 : vector<2x8x8xf32>
    %69 = math.exp %68 : vector<2x8x8xf32>
    %cst_24 = arith.constant dense<0.000000e+00> : vector<2x8xf32>
    %70 = vector.multi_reduction <add>, %69, %cst_24 [2] : vector<2x8x8xf32> to vector<2x8xf32>
    %71 = vector.shape_cast %70 : vector<2x8xf32> to vector<2x8x1xf32>
    %72 = tpu.reciprocal %71 : vector<2x8x1xf32> -> vector<2x8x1xf32>
    %73 = vector.broadcast %72 : vector<2x8x1xf32> to vector<2x8x8xf32>
    %74 = arith.mulf %69, %73 : vector<2x8x8xf32>
    "tpu.trace_start"() <{level = 10 : i32, message = "bqk,bkd->bqd"}> : () -> ()
    %cst_25 = arith.constant dense<0.000000e+00> : vector<2x8x8xf32>
    %75 = tpu.matmul %74, %63, %cst_25 {dimension_numbers = #tpu.dot_dimension_numbers<[2], [1], [1], [2], [0, 0, 0, 1, 1, 2], [0], [0]>} : vector<2x8x8xf32>, vector<2x8x8xf32>, vector<2x8x8xf32> -> vector<2x8x8xf32>
    "tpu.trace_stop"() : () -> ()
    %76 = vector.extract_strided_slice %30 {offsets = [0, 0, 24], sizes = [2, 8, 8], strides = [1, 1, 1]} : vector<2x8x96xf32> to vector<2x8x8xf32>
    %77 = vector.extract_strided_slice %30 {offsets = [0, 0, 56], sizes = [2, 8, 8], strides = [1, 1, 1]} : vector<2x8x96xf32> to vector<2x8x8xf32>
    %78 = vector.extract_strided_slice %30 {offsets = [0, 0, 88], sizes = [2, 8, 8], strides = [1, 1, 1]} : vector<2x8x96xf32> to vector<2x8x8xf32>
    "tpu.trace_start"() <{level = 10 : i32, message = "bqd,bkd->bqk"}> : () -> ()
    %cst_26 = arith.constant dense<0.000000e+00> : vector<2x8x8xf32>
    %79 = tpu.matmul %76, %77, %cst_26 {dimension_numbers = #tpu.dot_dimension_numbers<[2], [2], [1], [1], [0, 0, 0, 1, 1, 1], [0], [0]>} : vector<2x8x8xf32>, vector<2x8x8xf32>, vector<2x8x8xf32> -> vector<2x8x8xf32>
    "tpu.trace_stop"() : () -> ()
    %cst_27 = arith.constant dense<0xFF800000> : vector<2x8xf32>
    %80 = vector.multi_reduction <maximumf>, %79, %cst_27 [2] : vector<2x8x8xf32> to vector<2x8xf32>
    %81 = vector.shape_cast %80 : vector<2x8xf32> to vector<2x8x1xf32>
    %82 = vector.broadcast %81 : vector<2x8x1xf32> to vector<2x8x8xf32>
    %83 = arith.subf %79, %82 : vector<2x8x8xf32>
    %84 = math.exp %83 : vector<2x8x8xf32>
    %cst_28 = arith.constant dense<0.000000e+00> : vector<2x8xf32>
    %85 = vector.multi_reduction <add>, %84, %cst_28 [2] : vector<2x8x8xf32> to vector<2x8xf32>
    %86 = vector.shape_cast %85 : vector<2x8xf32> to vector<2x8x1xf32>
    %87 = tpu.reciprocal %86 : vector<2x8x1xf32> -> vector<2x8x1xf32>
    %88 = vector.broadcast %87 : vector<2x8x1xf32> to vector<2x8x8xf32>
    %89 = arith.mulf %84, %88 : vector<2x8x8xf32>
    "tpu.trace_start"() <{level = 10 : i32, message = "bqk,bkd->bqd"}> : () -> ()
    %cst_29 = arith.constant dense<0.000000e+00> : vector<2x8x8xf32>
    %90 = tpu.matmul %89, %78, %cst_29 {dimension_numbers = #tpu.dot_dimension_numbers<[2], [1], [1], [2], [0, 0, 0, 1, 1, 2], [0], [0]>} : vector<2x8x8xf32>, vector<2x8x8xf32>, vector<2x8x8xf32> -> vector<2x8x8xf32>
    "tpu.trace_stop"() : () -> ()
    %91 = tpu.concatenate %45, %60, %75, %90 in 2 : vector<2x8x8xf32>, vector<2x8x8xf32>, vector<2x8x8xf32>, vector<2x8x8xf32> -> vector<2x8x32xf32>
    %92 = vector.shape_cast %91 : vector<2x8x32xf32> to vector<16x32xf32>
    %c0_30 = arith.constant 0 : index
    %c0_31 = arith.constant 0 : index
    %93 = vector.load %arg5[%c0_30, %c0_31] : memref<32x32xf32, #tpu.memory_space<vmem>>, vector<32x32xf32>
    %cst_32 = arith.constant dense<0.000000e+00> : vector<16x32xf32>
    %94 = tpu.matmul %92, %93, %cst_32 {dimension_numbers = #tpu.dot_dimension_numbers<[1], [0], [0], [1], [0, 0, 1, 1], [], []>} : vector<16x32xf32>, vector<32x32xf32>, vector<16x32xf32> -> vector<16x32xf32>
    %c0_33 = arith.constant 0 : index
    %c0_34 = arith.constant 0 : index
    %95 = vector.load %arg6[%c0_33, %c0_34] : memref<1x32xf32, #tpu.memory_space<vmem>>, vector<1x32xf32>
    %96 = vector.broadcast %95 : vector<1x32xf32> to vector<16x32xf32>
    %97 = arith.addf %94, %96 : vector<16x32xf32>
    %98 = arith.addf %24, %97 : vector<16x32xf32>
    %c0_35 = arith.constant 0 : index
    %c0_36 = arith.constant 0 : index
    %99 = vector.load %arg7[%c0_35, %c0_36] : memref<1x32xf32, #tpu.memory_space<vmem>>, vector<1x32xf32>
    %c0_37 = arith.constant 0 : index
    %c0_38 = arith.constant 0 : index
    %100 = vector.load %arg8[%c0_37, %c0_38] : memref<1x32xf32, #tpu.memory_space<vmem>>, vector<1x32xf32>
    %cst_39 = arith.constant dense<0.000000e+00> : vector<16xf32>
    %101 = vector.multi_reduction <add>, %98, %cst_39 [1] : vector<16x32xf32> to vector<16xf32>
    %102 = vector.shape_cast %101 : vector<16xf32> to vector<16x1xf32>
    %cst_40 = arith.constant 3.200000e+01 : f32
    %103 = vector.broadcast %cst_40 : f32 to vector<16x1xf32>
    %104 = arith.divf %102, %103 : vector<16x1xf32>
    %105 = vector.broadcast %104 : vector<16x1xf32> to vector<16x32xf32>
    %106 = arith.subf %98, %105 : vector<16x32xf32>
    %107 = arith.mulf %106, %106 : vector<16x32xf32>
    %cst_41 = arith.constant dense<0.000000e+00> : vector<16xf32>
    %108 = vector.multi_reduction <add>, %107, %cst_41 [1] : vector<16x32xf32> to vector<16xf32>
    %109 = vector.shape_cast %108 : vector<16xf32> to vector<16x1xf32>
    %cst_42 = arith.constant 3.200000e+01 : f32
    %110 = vector.broadcast %cst_42 : f32 to vector<16x1xf32>
    %111 = arith.divf %109, %110 : vector<16x1xf32>
    %112 = vector.broadcast %104 : vector<16x1xf32> to vector<16x32xf32>
    %113 = arith.subf %98, %112 : vector<16x32xf32>
    %cst_43 = arith.constant 9.99999974E-6 : f32
    %114 = vector.broadcast %cst_43 : f32 to vector<16x1xf32>
    %115 = arith.addf %111, %114 : vector<16x1xf32>
    %116 = math.rsqrt %115 : vector<16x1xf32>
    %117 = vector.broadcast %116 : vector<16x1xf32> to vector<16x32xf32>
    %118 = arith.mulf %113, %117 : vector<16x32xf32>
    %119 = vector.broadcast %99 : vector<1x32xf32> to vector<16x32xf32>
    %120 = arith.mulf %118, %119 : vector<16x32xf32>
    %121 = vector.broadcast %100 : vector<1x32xf32> to vector<16x32xf32>
    %122 = arith.addf %120, %121 : vector<16x32xf32>
    %c0_44 = arith.constant 0 : index
    %c0_45 = arith.constant 0 : index
    %123 = vector.load %arg9[%c0_44, %c0_45] : memref<32x128xf32, #tpu.memory_space<vmem>>, vector<32x128xf32>
    %cst_46 = arith.constant dense<0.000000e+00> : vector<16x128xf32>
    %124 = tpu.matmul %122, %123, %cst_46 {dimension_numbers = #tpu.dot_dimension_numbers<[1], [0], [0], [1], [0, 0, 1, 1], [], []>} : vector<16x32xf32>, vector<32x128xf32>, vector<16x128xf32> -> vector<16x128xf32>
    %c0_47 = arith.constant 0 : index
    %c0_48 = arith.constant 0 : index
    %125 = vector.load %arg10[%c0_47, %c0_48] : memref<1x128xf32, #tpu.memory_space<vmem>>, vector<1x128xf32>
    %126 = vector.broadcast %125 : vector<1x128xf32> to vector<16x128xf32>
    %127 = arith.addf %124, %126 : vector<16x128xf32>
    %cst_49 = arith.constant 5.000000e-01 : f32
    %128 = vector.broadcast %cst_49 : f32 to vector<16x128xf32>
    %129 = arith.mulf %128, %127 : vector<16x128xf32>
    %cst_50 = arith.constant 0.707106769 : f32
    %130 = vector.broadcast %cst_50 : f32 to vector<16x128xf32>
    %131 = arith.mulf %127, %130 : vector<16x128xf32>
    %cst_51 = arith.constant 0.000000e+00 : f32
    %132 = vector.broadcast %cst_51 : f32 to vector<16x128xf32>
    %133 = arith.cmpf oge, %131, %132 : vector<16x128xf32>
    %cst_52 = arith.constant 1.000000e+00 : f32
    %cst_53 = arith.constant -1.000000e+00 : f32
    %134 = vector.broadcast %cst_52 : f32 to vector<16x128xf32>
    %135 = vector.broadcast %cst_53 : f32 to vector<16x128xf32>
    %136 = arith.select %133, %134, %135 : vector<16x128xi1>, vector<16x128xf32>
    %137 = math.absf %131 : vector<16x128xf32>
    %cst_54 = arith.constant 0.327591091 : f32
    %138 = vector.broadcast %cst_54 : f32 to vector<16x128xf32>
    %139 = arith.mulf %138, %137 : vector<16x128xf32>
    %cst_55 = arith.constant 1.000000e+00 : f32
    %140 = vector.broadcast %cst_55 : f32 to vector<16x128xf32>
    %141 = arith.addf %140, %139 : vector<16x128xf32>
    %cst_56 = arith.constant 1.000000e+00 : f32
    %142 = vector.broadcast %cst_56 : f32 to vector<16x128xf32>
    %143 = arith.divf %142, %141 : vector<16x128xf32>
    %cst_57 = arith.constant 1.06140542 : f32
    %144 = vector.broadcast %cst_57 : f32 to vector<16x128xf32>
    %145 = arith.mulf %144, %143 : vector<16x128xf32>
    %cst_58 = arith.constant -1.45315206 : f32
    %146 = vector.broadcast %cst_58 : f32 to vector<16x128xf32>
    %147 = arith.addf %145, %146 : vector<16x128xf32>
    %148 = arith.mulf %147, %143 : vector<16x128xf32>
    %cst_59 = arith.constant 1.42141378 : f32
    %149 = vector.broadcast %cst_59 : f32 to vector<16x128xf32>
    %150 = arith.addf %148, %149 : vector<16x128xf32>
    %151 = arith.mulf %150, %143 : vector<16x128xf32>
    %cst_60 = arith.constant -0.284496725 : f32
    %152 = vector.broadcast %cst_60 : f32 to vector<16x128xf32>
    %153 = arith.addf %151, %152 : vector<16x128xf32>
    %154 = arith.mulf %153, %143 : vector<16x128xf32>
    %cst_61 = arith.constant 0.254829586 : f32
    %155 = vector.broadcast %cst_61 : f32 to vector<16x128xf32>
    %156 = arith.addf %154, %155 : vector<16x128xf32>
    %157 = arith.mulf %156, %143 : vector<16x128xf32>
    %cst_62 = arith.constant 0.000000e+00 : f32
    %158 = vector.broadcast %cst_62 : f32 to vector<16x128xf32>
    %159 = arith.subf %158, %137 : vector<16x128xf32>
    %160 = arith.mulf %159, %137 : vector<16x128xf32>
    %161 = math.exp %160 : vector<16x128xf32>
    %162 = arith.mulf %157, %161 : vector<16x128xf32>
    %cst_63 = arith.constant 1.000000e+00 : f32
    %163 = vector.broadcast %cst_63 : f32 to vector<16x128xf32>
    %164 = arith.subf %163, %162 : vector<16x128xf32>
    %165 = arith.mulf %136, %164 : vector<16x128xf32>
    %cst_64 = arith.constant 1.000000e+00 : f32
    %166 = vector.broadcast %cst_64 : f32 to vector<16x128xf32>
    %167 = arith.addf %166, %165 : vector<16x128xf32>
    %168 = arith.mulf %129, %167 : vector<16x128xf32>
    %c0_65 = arith.constant 0 : index
    %c0_66 = arith.constant 0 : index
    %169 = vector.load %arg11[%c0_65, %c0_66] : memref<128x32xf32, #tpu.memory_space<vmem>>, vector<128x32xf32>
    %cst_67 = arith.constant dense<0.000000e+00> : vector<16x32xf32>
    %170 = tpu.matmul %168, %169, %cst_67 {dimension_numbers = #tpu.dot_dimension_numbers<[1], [0], [0], [1], [0, 0, 1, 1], [], []>} : vector<16x128xf32>, vector<128x32xf32>, vector<16x32xf32> -> vector<16x32xf32>
    %c0_68 = arith.constant 0 : index
    %c0_69 = arith.constant 0 : index
    %171 = vector.load %arg12[%c0_68, %c0_69] : memref<1x32xf32, #tpu.memory_space<vmem>>, vector<1x32xf32>
    %172 = vector.broadcast %171 : vector<1x32xf32> to vector<16x32xf32>
    %173 = arith.addf %170, %172 : vector<16x32xf32>
    %174 = arith.addf %122, %173 : vector<16x32xf32>
    %c0_70 = arith.constant 0 : index
    %c0_71 = arith.constant 0 : index
    %175 = vector.load %arg13[%c0_70, %c0_71] : memref<16x32xf32, #tpu.memory_space<vmem>>, vector<16x32xf32>
    tpu.vector_store %arg13[%c0_70, %c0_71], %174 {strides = array<i32>} : memref<16x32xf32, #tpu.memory_space<vmem>>, vector<16x32xf32>,
    return
  }
}

</mosaic_0001>

<bundles_post_ra>
// kernel: encoder_block.1
= control target key start
LH: loop header
LB: loop body
LE: loop exit
PB: predicated region body
PF: predicated region fallthrough
CT: control target
= control target key end

     0   :  { %vm49_vm0 = vcmask 261120   ;;  %s2719_s0 = inlined_call_operand.vmem [shape: f32[16,32], index: 0, kind: input, shape index: {}]   ;;  %s2720_s1 = inlined_call_operand.vmem [shape: f32[1,32], index: 1, kind: input, shape index: {}]   ;;  %s2721_s2 = inlined_call_operand.vmem [shape: f32[1,32], index: 2, kind: input, shape index: {}]   ;;  %s2722_s3 = inlined_call_operand.vmem [shape: f32[32,96], index: 3, kind: input, shape index: {}]   ;;  %s2723_s4 = inlined_call_operand.vmem [shape: f32[1,96], index: 4, kind: input, shape index: {}]   ;;  %s2724_s5 = inlined_call_operand.vmem [shape: f32[32,32], index: 5, kind: input, shape index: {}]   ;;  %s2725_s6 = inlined_call_operand.vmem [shape: f32[1,32], index: 6, kind: input, shape index: {}]   ;;  %s2726_s7 = inlined_call_operand.vmem [shape: f32[1,32], index: 7, kind: input, shape index: {}]   ;;  %s2727_s8 = inlined_call_operand.vmem [shape: f32[1,32], index: 8, kind: input, shape index: {}]   ;;  %s2728_s9 = inlined_call_operand.vmem [shape: f32[32,128], index: 9, kind: input, shape index: {}]   ;;  %s2729_s10 = inlined_call_operand.vmem [shape: f32[1,128], index: 10, kind: input, shape index: {}]   ;;  %s2730_s11 = inlined_call_operand.vmem [shape: f32[128,32], index: 11, kind: input, shape index: {}]   ;;  %s2731_s12 = inlined_call_operand.vmem [shape: f32[1,32], index: 12, kind: input, shape index: {}]   ;;  %s2732_s13 = inlined_call_operand.hbm [shape: f32[16,32], index: 13, kind: output, shape index: {}]  }
   0x1   :  { %v45_v0 = vld [vmem:[%s2719_s0] sm:$0xff]  ;;  %v46_v1 = vld [vmem:[%s2719_s0 + $0x8] sm:$0xff] }
   0x2   :  { %18 = vsyncpa [#allocation3], 0  ;;  %v50_v2 = vsel %vm49_vm0, %v45_v0, 0.0  ;;  %v53_v3 = vsel %vm49_vm0, %v46_v1, 0.0  ;;  %v93_v14 = vld [vmem:[%s2722_s3] sm:$0xff]  ;;  %v94_v15 = vld [vmem:[%s2722_s3 + $0x8] sm:$0xff] }
   0x3   :  { %51 = vadd.xlane.f32.xlu0 %v50_v2  ;;  %v95_v16 = vld [vmem:[%s2722_s3 + $0x10] sm:$0xff]  ;;  %v2192_v17 = vpack.c.bf16 %v94_v15, %v93_v14  ;;  %v96_v18 = vld [vmem:[%s2722_s3 + $0x18] sm:$0xff]  ;;  %v1938_v27 = vld [vmem:[%s2720_s1] ss:$0 sm:$0xff]  ;;  %v2339_v36 = vmov 0.0   ;;  %vm2340_vm1 = vmmov 0  }
   0x4   :  { %v2196_v19 = vpack.c.bf16 %v96_v18, %v95_v16  ;;  %v1939_v29 = vld [vmem:[%s2721_s2] ss:$0 sm:$0xff]  ;;  %2065 = vmatprep.subr.mxu0 %v2339_v36  ;;  %2067 = vmatprep.mubr.msk.f32.mxu0 %vm2340_vm1, %v2339_v36  ;;  %s2341_s22 = smov 96   ;;  %vm188_vm2 = vcmask 64512   ;;  %s2343_s23 = smov 88   ;;  %vm1533_vm3 = vcmask 195584  }
   0x5   :  { %2193 = vmatprep.subr.bf16.mxu1 %v2192_v17  ;;  %v1940_v37 = vld [vmem:[%s2723_s4] ss:$0 sm:$0xff]  ;;  %s2342_s4 = smov 64   ;;  %s2344_s24 = smov 120   ;;  %vm1530_vm4 = vcmask 130048  }
   0x6   :  { %2195 = vmatpush3.bf16.msra.mxu1 %v2192_v17  ;;  %s2345_s25 = smov 56   ;;  %s2346_s26 = smov 80  }
   0x7   :  { %54 = vadd.xlane.f32.xlu0 %v53_v3  ;;  %2197 = vmatprep.subr.bf16.mxu1 %v2196_v19  ;;  %s2347_s27 = smov 112   ;;  %s2348_s28 = smov 48  }
   0x8   :  { %s2349_s0 = smov 72   ;;  %s2350_s29 = smov 104  }
   0x9   :  { %s2351_s30 = smov 40   ;;  %s2352_s14 = smov 8  }
   0xa   :  { %2199 = vmatpush3.bf16.msra.mxu1 %v2196_v19  ;;  %s2353_s15 = smov 16   ;;  %s2354_s2 = smov 24  }
   0xb   :  { %2055 = vmatprep.subr.mxu1 %v2339_v36  ;;  %s2356_s3 = smov [#allocation2]  }
   0xc   :  { %s1927_s21 = sshll.u32 %s2356_s3, 4  ;;  %s1928_s21 = int_to_ptr.vmem [resolvable:$true] %s1927_s21 }
   0xd   :  { %s2315_s1 = scalar_lea.vmem %s1928_s21, 256  ;;  %p2320_p1 = scmp.lt.s32.totalorder %s1928_s21, %s1928_s21 }
   0xe   :  { %p2316_p0 = scmp.ne.s32.totalorder %s1928_s21, %s2315_s1  ;;  %p2321_p2 = scmp.lt.s32.totalorder %s2315_s1, %s2315_s1 }
  0x10   :  { %p2322_p3 = por %p2321_p2, %p2320_p1 }
  0x12   :  { %p2323_p4 = pnand %p2322_p3, %p2316_p0 }
  0x90   :  { %v52_v4 = vpop.xlane.xlu0 %51 }
  0x91   :  { %v57_v5 = vmul.f32 0.03125, %v52_v4 }
  0x93   :  { %v59_v6 = vsub.f32 %v45_v0, %v57_v5 }
  0x94   :  { %v55_v7 = vpop.xlane.xlu0 %54 }
  0x95   :  { %v58_v8 = vmul.f32 0.03125, %v55_v7  ;;  %v61_v9 = vmul.f32 %v59_v6, %v59_v6 }
  0x97   :  { %v60_v10 = vsub.f32 %v46_v1, %v58_v8  ;;  %v63_v11 = vsel %vm49_vm0, %v61_v9, 0.0 }
  0x98   :  { %64 = vadd.xlane.f32.xlu1 %v63_v11 }
  0x99   :  { %v62_v12 = vmul.f32 %v60_v10, %v60_v10 }
  0x9b   :  { %v66_v13 = vsel %vm49_vm0, %v62_v12, 0.0 }
  0x9c   :  { %67 = vadd.xlane.f32.xlu1 %v66_v13 }
 0x125   :  { %v65_v20 = vpop.xlane.xlu1 %64 }
 0x126   :  { %v69_v21 = vmul.f32 0.03125, %v65_v20 }
 0x128   :  { %v71_v22 = vadd.f32 1e-05, %v69_v21 }
 0x129   :  { %v68_v23 = vpop.xlane.xlu1 %67 }
 0x12a   :  { %2267 = vrsqrt.f32 %v71_v22  ;;  %v70_v24 = vmul.f32 0.03125, %v68_v23 }
 0x12c   :  { %v72_v25 = vadd.f32 1e-05, %v70_v24 }
 0x12e   :  { %2269 = vrsqrt.f32 %v72_v25 }
 0x134   :  { %v2268_v26 = vpop.eup %2267 }
 0x135   :  { %v75_v28 = vmul.f32 %v2268_v26, %v59_v6 }
 0x137   :  { %v83_v30 = vmul.f32 %v1938_v27, %v75_v28 }
 0x138   :  { %v2270_v31 = vpop.eup %2269 }
 0x139   :  { %v76_v32 = vmul.f32 %v2270_v31, %v60_v10  ;;  %v2456_v33 = vadd.f32 %v1939_v29, %v83_v30 }
 0x13b   :  { %v84_v34 = vmul.f32 %v1938_v27, %v76_v32  ;;  %2052 = vmatprep.mubr.msk.f32.mxu1 %vm49_vm0, %v2456_v33 }
 0x13d   :  { %v2460_v35 = vadd.f32 %v1939_v29, %v84_v34 }
 0x13f   :  { %2053 = vmatmul.mubr.msk.f32.vlgmr.msra.gmra.mrb[0].mxu1 %vm49_vm0, %v2460_v35 }
 0x140   :  { %2057 = vmatprep.mubr.msk.f32.mxu1 %vm2340_vm1, %v2339_v36 }
 0x212   :  { %v2054_v38 = vpop.f32.mrb[0].mxu1 }
 0x213   :  { %v2473_v39 = vadd.f32 %v2054_v38, %v1940_v37  ;;  %v176_v40 = vpop.f32.mrb[1].mxu1 }
 0x214   :  { %v2475_v41 = vadd.f32 %v1940_v37, %v176_v40 }
 0x215   :  { %264 = vrot.lane.b32.xlu1 %v2473_v39, %s2341_s22 }
 0x216   :  { %186 = vrot.lane.b32.xlu0 %v2475_v41, %s2341_s22 }
 0x287   :  { %v265_v43 = vpop.permute.xlu1 %264 }
 0x288   :  { %v187_v42 = vpop.permute.xlu0 %186 }
 0x289   :  { %2056 = vmatpush3.xpose.msk.msra.mxu1 %vm188_vm2, %v187_v42 }
 0x28a   :  { %2060 = vmatprep.subr.mxu1 %v2339_v36 }
 0x28c   :  { %2058 = vmatmul.mubr.msk.f32.vlgmr.msra.gmra.mrb[2].mxu1 %vm188_vm2, %v2475_v41 }
 0x28d   :  { %2061 = vmatpush3.xpose.msk.msra.mxu1 %vm188_vm2, %v265_v43  ;;  %2062 = vmatprep.mubr.msk.f32.mxu1 %vm2340_vm1, %v2339_v36 }
 0x28e   :  { %2070 = vmatprep.subr.mxu1 %v2339_v36 }
 0x290   :  { %2063 = vmatmul.mubr.msk.f32.vlgmr.msra.gmra.mrb[4].mxu1 %vm188_vm2, %v2473_v39 }
 0x291   :  { %2072 = vmatprep.mubr.msk.f32.mxu1 %vm2340_vm1, %v2339_v36 }
 0x35f   :  { %v259_v44 = vpop.f32.mrb[2].mxu1 }
 0x360   :  { %v2059_v45 = vpop.f32.mrb[3].mxu1  ;;  %v340_v46 = vsel %vm188_vm2, %v259_v44, -inf }
 0x361   :  { %341 = vmax.xlane.f32.xlu1 %v340_v46 }
 0x363   :  { %v336_v47 = vpop.f32.mrb[4].mxu1 }
 0x364   :  { %v2064_v48 = vpop.f32.mrb[5].mxu1  ;;  %v343_v49 = vsel %vm188_vm2, %v336_v47, -inf }
 0x365   :  { %344 = vmax.xlane.f32.xlu0 %v343_v49 }
 0x372   :  { %438 = vrot.lane.b32.xlu1 %v2473_v39, %s2342_s4 }
 0x376   :  { %516 = vrot.lane.b32.xlu1 %v2475_v41, %s2343_s23 }
 0x37a   :  { %594 = vrot.lane.b32.xlu1 %v2473_v39, %s2343_s23 }
 0x37b   :  { %362 = vrot.lane.b32.xlu0 %v2475_v41, %s2342_s4 }
 0x3ee   :  { %v342_v50 = vpop.xlane.xlu1 %341 }
 0x3ef   :  { %v346_v51 = vsub.f32 %v259_v44, %v342_v50 }
 0x3f1   :  { %v348_v52 = vmul.f32 1.442695, %v346_v51 }
 0x3f2   :  { %v439_v53 = vpop.permute.xlu1 %438  ;;  %v345_v54 = vpop.xlane.xlu0 %344 }
 0x3f3   :  { %2271 = vpow2.f32 %v348_v52  ;;  %v347_v55 = vsub.f32 %v336_v47, %v345_v54  ;;  %2071 = vmatpush3.msra.mxu1 %v439_v53 }
 0x3f4   :  { %2080 = vmatprep.subr.mxu1 %v2339_v36 }
 0x3f5   :  { %v350_v56 = vmul.f32 1.442695, %v347_v55 }
 0x3f6   :  { %v363_v57 = vpop.permute.xlu0 %362  ;;  %v517_v62 = vpop.permute.xlu1 %516 }
 0x3f7   :  { %2273 = vpow2.f32 %v350_v56  ;;  %2066 = vmatpush3.msra.mxu0 %v363_v57 }
 0x3f8   :  { %2075 = vmatprep.subr.mxu0 %v2339_v36 }
 0x3fa   :  { %v595_v63 = vpop.permute.xlu1 %594 }
 0x3fd   :  { %v2272_v58 = vpop.eup %2271 }
 0x3fe   :  { %v352_v59 = vsel %vm188_vm2, %v2272_v58, 0.0 }
 0x3ff   :  { %353 = vadd.xlane.f32.xlu0 %v352_v59 }
 0x401   :  { %v2274_v60 = vpop.eup %2273 }
 0x402   :  { %v355_v61 = vsel %vm188_vm2, %v2274_v60, 0.0 }
 0x403   :  { %356 = vadd.xlane.f32.xlu1 %v355_v61 }
 0x414   :  { %592 = vrot.lane.b32.xlu1 %v2473_v39, %s2344_s24 }
 0x415   :  { %514 = vrot.lane.b32.xlu0 %v2475_v41, %s2344_s24 }
 0x48c   :  { %v354_v0 = vpop.xlane.xlu0 %353 }
 0x48d   :  { %2275 = vrcp.f32 %v354_v0 }
 0x490   :  { %v357_v1 = vpop.xlane.xlu1 %356  ;;  %v515_v6 = vpop.permute.xlu0 %514 }
 0x491   :  { %2277 = vrcp.f32 %v357_v1 }
 0x494   :  { %v593_v7 = vpop.permute.xlu1 %592 }
 0x497   :  { %v2276_v2 = vpop.eup %2275 }
 0x498   :  { %v360_v3 = vmul.f32 %v2276_v2, %v2272_v58 }
 0x49a   :  { %2068 = vmatmul.mubr.msk.f32.vlgmr.msra.gmra.mrb[0].mxu0 %vm188_vm2, %v360_v3 }
 0x49b   :  { %v2278_v4 = vpop.eup %2277  ;;  %2076 = vmatpush3.xpose.msk.msra.mxu0 %vm188_vm2, %v517_v62  ;;  %2077 = vmatprep.mubr.msk.f32.mxu0 %vm2340_vm1, %v2339_v36 }
 0x49c   :  { %v361_v5 = vmul.f32 %v2278_v4, %v2274_v60  ;;  %2085 = vmatprep.subr.mxu0 %v2339_v36 }
 0x49e   :  { %2073 = vmatmul.mubr.msk.f32.vlgmr.msra.gmra.mrb[6].mxu1 %vm188_vm2, %v361_v5  ;;  %2078 = vmatmul.mubr.msk.f32.vlgmr.msra.gmra.mrb[2].mxu0 %vm188_vm2, %v515_v6 }
 0x49f   :  { %2081 = vmatpush3.xpose.msk.msra.mxu1 %vm188_vm2, %v595_v63  ;;  %2082 = vmatprep.mubr.msk.f32.mxu1 %vm2340_vm1, %v2339_v36 }
 0x4a0   :  { %2090 = vmatprep.subr.mxu1 %v2339_v36  ;;  %2087 = vmatprep.mubr.msk.f32.mxu0 %vm2340_vm1, %v2339_v36 }
 0x4a2   :  { %2083 = vmatmul.mubr.msk.f32.vlgmr.msra.gmra.mrb[8].mxu1 %vm188_vm2, %v593_v7 }
 0x4a3   :  { %2092 = vmatprep.mubr.msk.f32.mxu1 %vm2340_vm1, %v2339_v36 }
 0x56d   :  { %v2519_v8 = vpop.f32.mrb[0].mxu0 }
 0x56e   :  { %v2069_v9 = vpop.f32.mrb[1].mxu0 }
 0x571   :  { %v2521_v10 = vpop.f32.mrb[6].mxu1  ;;  %v588_v11 = vpop.f32.mrb[2].mxu0 }
 0x572   :  { %v2074_v12 = vpop.f32.mrb[7].mxu1  ;;  %v2079_v13 = vpop.f32.mrb[3].mxu0  ;;  %v670_v14 = vsel %vm188_vm2, %v588_v11, -inf }
 0x573   :  { %671 = vmax.xlane.f32.xlu0 %v670_v14 }
 0x575   :  { %v666_v15 = vpop.f32.mrb[8].mxu1 }
 0x576   :  { %v2084_v16 = vpop.f32.mrb[9].mxu1  ;;  %v673_v17 = vsel %vm188_vm2, %v666_v15, -inf }
 0x577   :  { %674 = vmax.xlane.f32.xlu1 %v673_v17 }
 0x588   :  { %768 = vrot.lane.b32.xlu1 %v2473_v39, %s2345_s25 }
 0x589   :  { %692 = vrot.lane.b32.xlu0 %v2475_v41, %s2345_s25 }
 0x58c   :  { %846 = vrot.lane.b32.xlu1 %v2475_v41, %s2346_s26 }
 0x590   :  { %924 = vrot.lane.b32.xlu1 %v2473_v39, %s2346_s26 }
 0x594   :  { %922 = vrot.lane.b32.xlu1 %v2473_v39, %s2347_s27 }
 0x600   :  { %v672_v18 = vpop.xlane.xlu0 %671 }
 0x601   :  { %v676_v19 = vsub.f32 %v588_v11, %v672_v18 }
 0x603   :  { %v678_v20 = vmul.f32 1.442695, %v676_v19 }
 0x604   :  { %v693_v21 = vpop.permute.xlu0 %692  ;;  %v675_v22 = vpop.xlane.xlu1 %674 }
 0x605   :  { %2279 = vpow2.f32 %v678_v20  ;;  %v677_v23 = vsub.f32 %v666_v15, %v675_v22  ;;  %2086 = vmatpush3.msra.mxu0 %v693_v21 }
 0x606   :  { %2095 = vmatprep.subr.mxu0 %v2339_v36 }
 0x607   :  { %v680_v24 = vmul.f32 1.442695, %v677_v23 }
 0x608   :  { %v769_v25 = vpop.permute.xlu1 %768 }
 0x609   :  { %2281 = vpow2.f32 %v680_v24  ;;  %2091 = vmatpush3.msra.mxu1 %v769_v25 }
 0x60a   :  { %2100 = vmatprep.subr.mxu1 %v2339_v36 }
 0x60c   :  { %v847_v32 = vpop.permute.xlu1 %846 }
 0x60f   :  { %v2280_v26 = vpop.eup %2279 }
 0x610   :  { %v682_v27 = vsel %vm188_vm2, %v2280_v26, 0.0  ;;  %v925_v40 = vpop.permute.xlu1 %924 }
 0x611   :  { %683 = vadd.xlane.f32.xlu0 %v682_v27 }
 0x613   :  { %v2282_v28 = vpop.eup %2281 }
 0x614   :  { %v685_v29 = vsel %vm188_vm2, %v2282_v28, 0.0  ;;  %v923_v44 = vpop.permute.xlu1 %922 }
 0x615   :  { %686 = vadd.xlane.f32.xlu0 %v685_v29 }
 0x62b   :  { %844 = vrot.lane.b32.xlu0 %v2475_v41, %s2347_s27 }
 0x69e   :  { %v684_v30 = vpop.xlane.xlu0 %683 }
 0x69f   :  { %2283 = vrcp.f32 %v684_v30 }
 0x6a2   :  { %v687_v31 = vpop.xlane.xlu0 %686 }
 0x6a3   :  { %2285 = vrcp.f32 %v687_v31 }
 0x6a6   :  { %v845_v43 = vpop.permute.xlu0 %844 }
 0x6a9   :  { %v2284_v34 = vpop.eup %2283 }
 0x6aa   :  { %v690_v37 = vmul.f32 %v2284_v34, %v2280_v26 }
 0x6ac   :  { %2088 = vmatmul.mubr.msk.f32.vlgmr.msra.gmra.mrb[4].mxu0 %vm188_vm2, %v690_v37 }
 0x6ad   :  { %v2286_v38 = vpop.eup %2285  ;;  %2096 = vmatpush3.xpose.msk.msra.mxu0 %vm188_vm2, %v847_v32  ;;  %2097 = vmatprep.mubr.msk.f32.mxu0 %vm2340_vm1, %v2339_v36 }
 0x6ae   :  { %v691_v42 = vmul.f32 %v2286_v38, %v2282_v28  ;;  %2105 = vmatprep.subr.mxu0 %v2339_v36 }
 0x6b0   :  { %2093 = vmatmul.mubr.msk.f32.vlgmr.msra.gmra.mrb[10].mxu1 %vm188_vm2, %v691_v42  ;;  %2098 = vmatmul.mubr.msk.f32.vlgmr.msra.gmra.mrb[6].mxu0 %vm188_vm2, %v845_v43 }
 0x6b1   :  { %2101 = vmatpush3.xpose.msk.msra.mxu1 %vm188_vm2, %v925_v40  ;;  %2102 = vmatprep.mubr.msk.f32.mxu1 %vm2340_vm1, %v2339_v36 }
 0x6b2   :  { %2110 = vmatprep.subr.mxu1 %v2339_v36  ;;  %2107 = vmatprep.mubr.msk.f32.mxu0 %vm2340_vm1, %v2339_v36 }
 0x6b4   :  { %2103 = vmatmul.mubr.msk.f32.vlgmr.msra.gmra.mrb[12].mxu1 %vm188_vm2, %v923_v44 }
 0x6b5   :  { %2112 = vmatprep.mubr.msk.f32.mxu1 %vm2340_vm1, %v2339_v36 }
 0x77f   :  { %v2551_v45 = vpop.f32.mrb[4].mxu0 }
 0x780   :  { %v2089_v46 = vpop.f32.mrb[5].mxu0 }
 0x781   :  { %v1536_v46 = vld [vmem:[%s2724_s5] sm:$0xff] }
 0x783   :  { %v2553_v47 = vpop.f32.mrb[10].mxu1  ;;  %v918_v48 = vpop.f32.mrb[6].mxu0 }
 0x784   :  { %v2094_v49 = vpop.f32.mrb[11].mxu1  ;;  %v2099_v50 = vpop.f32.mrb[7].mxu0  ;;  %v1000_v51 = vsel %vm188_vm2, %v918_v48, -inf }
 0x785   :  { %1001 = vmax.xlane.f32.xlu0 %v1000_v51  ;;  %v1539_v49 = vld [vmem:[%s2724_s5 + $0x18] sm:$0xff] }
 0x787   :  { %v996_v52 = vpop.f32.mrb[12].mxu1 }
 0x788   :  { %v2104_v53 = vpop.f32.mrb[13].mxu1  ;;  %v1003_v54 = vsel %vm188_vm2, %v996_v52, -inf }
 0x789   :  { %1004 = vmax.xlane.f32.xlu1 %v1003_v54 }
 0x79a   :  { %1098 = vrot.lane.b32.xlu1 %v2473_v39, %s2348_s28 }
 0x79b   :  { %1022 = vrot.lane.b32.xlu0 %v2475_v41, %s2348_s28 }
 0x79e   :  { %1176 = vrot.lane.b32.xlu1 %v2475_v41, %s2349_s0 }
 0x7a2   :  { %1254 = vrot.lane.b32.xlu1 %v2473_v39, %s2349_s0 }
 0x7a6   :  { %1252 = vrot.lane.b32.xlu1 %v2473_v39, %s2350_s29 }
 0x812   :  { %v1002_v55 = vpop.xlane.xlu0 %1001 }
 0x813   :  { %v1006_v56 = vsub.f32 %v918_v48, %v1002_v55  ;;  %v1538_v48 = vld [vmem:[%s2724_s5 + $0x10] sm:$0xff] }
 0x814   :  { %v2204_v50 = vpack.c.bf16 %v1539_v49, %v1538_v48  ;;  %v1823_v48 = vld [vmem:[%s2730_s11 + $0x18] sm:$0xff] }
 0x815   :  { %v1008_v57 = vmul.f32 1.442695, %v1006_v56 }
 0x816   :  { %v1023_v58 = vpop.permute.xlu0 %1022  ;;  %v1005_v59 = vpop.xlane.xlu1 %1004 }
 0x817   :  { %2287 = vpow2.f32 %v1008_v57  ;;  %v1007_v60 = vsub.f32 %v996_v52, %v1005_v59  ;;  %2106 = vmatpush3.msra.mxu0 %v1023_v58 }
 0x818   :  { %2115 = vmatprep.subr.mxu0 %v2339_v36 }
 0x819   :  { %v1010_v61 = vmul.f32 1.442695, %v1007_v60 }
 0x81a   :  { %v1099_v62 = vpop.permute.xlu1 %1098 }
 0x81b   :  { %2289 = vpow2.f32 %v1010_v61  ;;  %2111 = vmatpush3.msra.mxu1 %v1099_v62 }
 0x81c   :  { %2120 = vmatprep.subr.mxu1 %v2339_v36 }
 0x81e   :  { %v1177_v5 = vpop.permute.xlu1 %1176 }
 0x821   :  { %v2288_v63 = vpop.eup %2287 }
 0x822   :  { %v1012_v0 = vsel %vm188_vm2, %v2288_v63, 0.0  ;;  %v1255_v11 = vpop.permute.xlu1 %1254 }
 0x823   :  { %1013 = vadd.xlane.f32.xlu0 %v1012_v0 }
 0x825   :  { %v2290_v1 = vpop.eup %2289 }
 0x826   :  { %v1015_v2 = vsel %vm188_vm2, %v2290_v1, 0.0  ;;  %v1253_v14 = vpop.permute.xlu1 %1252 }
 0x827   :  { %1016 = vadd.xlane.f32.xlu0 %v1015_v2 }
 0x83d   :  { %1174 = vrot.lane.b32.xlu0 %v2475_v41, %s2350_s29 }
 0x8b0   :  { %v1014_v3 = vpop.xlane.xlu0 %1013 }
 0x8b1   :  { %2291 = vrcp.f32 %v1014_v3  ;;  %v1967_v3 = vld [vmem:[%s2725_s6] ss:$0 sm:$0xff] }
 0x8b4   :  { %v1017_v4 = vpop.xlane.xlu0 %1016 }
 0x8b5   :  { %2293 = vrcp.f32 %v1017_v4 }
 0x8b8   :  { %v1175_v13 = vpop.permute.xlu0 %1174 }
 0x8bb   :  { %v2292_v6 = vpop.eup %2291 }
 0x8bc   :  { %v1020_v7 = vmul.f32 %v2292_v6, %v2288_v63 }
 0x8be   :  { %2108 = vmatmul.mubr.msk.f32.vlgmr.msra.gmra.mrb[8].mxu0 %vm188_vm2, %v1020_v7 }
 0x8bf   :  { %v2294_v9 = vpop.eup %2293  ;;  %2116 = vmatpush3.xpose.msk.msra.mxu0 %vm188_vm2, %v1177_v5  ;;  %2117 = vmatprep.mubr.msk.f32.mxu0 %vm2340_vm1, %v2339_v36 }
 0x8c0   :  { %v1021_v12 = vmul.f32 %v2294_v9, %v2290_v1  ;;  %2125 = vmatprep.subr.mxu0 %v2339_v36 }
 0x8c2   :  { %2113 = vmatmul.mubr.msk.f32.vlgmr.msra.gmra.mrb[14].mxu1 %vm188_vm2, %v1021_v12  ;;  %2118 = vmatmul.mubr.msk.f32.vlgmr.msra.gmra.mrb[10].mxu0 %vm188_vm2, %v1175_v13 }
 0x8c3   :  { %2121 = vmatpush3.xpose.msk.msra.mxu1 %vm188_vm2, %v1255_v11  ;;  %2122 = vmatprep.mubr.msk.f32.mxu1 %vm2340_vm1, %v2339_v36 }
 0x8c4   :  { %2130 = vmatprep.subr.mxu1 %v2339_v36  ;;  %2127 = vmatprep.mubr.msk.f32.mxu0 %vm2340_vm1, %v2339_v36 }
 0x8c6   :  { %2123 = vmatmul.mubr.msk.f32.vlgmr.msra.gmra.mrb[16].mxu1 %vm188_vm2, %v1253_v14 }
 0x8c7   :  { %2132 = vmatprep.mubr.msk.f32.mxu1 %vm2340_vm1, %v2339_v36 }
 0x991   :  { %v1094_v15 = vpop.f32.mrb[8].mxu0 }
 0x992   :  { %v2109_v16 = vpop.f32.mrb[9].mxu0 }
 0x995   :  { %v1170_v17 = vpop.f32.mrb[14].mxu1  ;;  %v1248_v18 = vpop.f32.mrb[10].mxu0 }
 0x996   :  { %v2114_v19 = vpop.f32.mrb[15].mxu1  ;;  %v2119_v20 = vpop.f32.mrb[11].mxu0  ;;  %v1330_v21 = vsel %vm188_vm2, %v1248_v18, -inf }
 0x997   :  { %1331 = vmax.xlane.f32.xlu0 %v1330_v21  ;;  %v1675_v21 = vld [vmem:[%s2728_s9 + $0x8] sm:$0xff] }
 0x999   :  { %v1326_v22 = vpop.f32.mrb[16].mxu1 }
 0x99a   :  { %v2124_v23 = vpop.f32.mrb[17].mxu1  ;;  %v1333_v24 = vsel %vm188_vm2, %v1326_v22, -inf }
 0x99b   :  { %1334 = vmax.xlane.f32.xlu1 %v1333_v24  ;;  %v1676_v23 = vld [vmem:[%s2728_s9 + $0x10] sm:$0xff]  ;;  %v1677_v24 = vld [vmem:[%s2728_s9 + $0x18] sm:$0xff] }
 0x9ac   :  { %1428 = vrot.lane.b32.xlu1 %v2473_v39, %s2351_s30 }
 0x9b0   :  { %1506 = vrot.lane.b32.xlu1 %v2551_v45, %s2352_s14 }
 0x9b4   :  { %1508 = vrot.lane.b32.xlu1 %v2553_v47, %s2352_s14 }
 0x9b8   :  { %1516 = vrot.lane.b32.xlu1 %v1170_v17, %s2353_s15 }
 0xa24   :  { %v1332_v36 = vpop.xlane.xlu0 %1331 }
 0xa25   :  { %v1336_v25 = vsub.f32 %v1248_v18, %v1332_v36  ;;  %v2212_v36 = vpack.c.bf16 %v1677_v24, %v1676_v23 }
 0xa27   :  { %v1338_v26 = vmul.f32 1.442695, %v1336_v25 }
 0xa28   :  { %v1335_v27 = vpop.xlane.xlu1 %1334 }
 0xa29   :  { %2295 = vpow2.f32 %v1338_v26  ;;  %v1337_v28 = vsub.f32 %v1326_v22, %v1335_v27 }
 0xa2b   :  { %v1340_v29 = vmul.f32 1.442695, %v1337_v28 }
 0xa2c   :  { %v1429_v30 = vpop.permute.xlu1 %1428 }
 0xa2d   :  { %2297 = vpow2.f32 %v1340_v29  ;;  %2131 = vmatpush3.msra.mxu1 %v1429_v30 }
 0xa30   :  { %v1507_v55 = vpop.permute.xlu1 %1506 }
 0xa31   :  { %v1528_v58 = vsel %vm188_vm2, %v2519_v8, %v1507_v55 }
 0xa33   :  { %v2296_v39 = vpop.eup %2295 }
 0xa34   :  { %v1342_v31 = vsel %vm188_vm2, %v2296_v39, 0.0  ;;  %v1509_v56 = vpop.permute.xlu1 %1508 }
 0xa35   :  { %1343 = vadd.xlane.f32.xlu0 %v1342_v31  ;;  %v1529_v63 = vsel %vm188_vm2, %v2521_v10, %v1509_v56  ;;  %v1970_v31 = vld [vmem:[%s2726_s7] ss:$0 sm:$0xff] }
 0xa36   :  { %v1828_v56 = vld [vmem:[%s2730_s11 + $0x40] sm:$0xff] }
 0xa37   :  { %v2298_v32 = vpop.eup %2297 }
 0xa38   :  { %v1345_v34 = vsel %vm188_vm2, %v2298_v32, 0.0  ;;  %v1517_v59 = vpop.permute.xlu1 %1516 }
 0xa39   :  { %1346 = vadd.xlane.f32.xlu0 %v1345_v34  ;;  %v1532_v0 = vsel %vm1530_vm4, %v1529_v63, %v1517_v59  ;;  %v1971_v34 = vld [vmem:[%s2727_s8] ss:$0 sm:$0xff]  ;;  %v1830_v59 = vld [vmem:[%s2730_s11 + $0x50] sm:$0xff]  ;;  %v1833_v63 = vld [vmem:[%s2730_s11 + $0x68] sm:$0xff] }
 0xa4f   :  { %1352 = vrot.lane.b32.xlu0 %v2475_v41, %s2351_s30  ;;  %v1537_v41 = vld [vmem:[%s2724_s5 + $0x8] sm:$0xff] }
 0xa50   :  { %v2200_v47 = vpack.c.bf16 %v1537_v41, %v1536_v46  ;;  %v1821_v46 = vld [vmem:[%s2730_s11 + $0x8] sm:$0xff] }
 0xa52   :  { %2201 = vmatprep.subr.bf16.mxu1 %v2200_v47 }
 0xa53   :  { %1514 = vrot.lane.b32.xlu0 %v1094_v15, %s2353_s15 }
 0xac2   :  { %v1344_v37 = vpop.xlane.xlu0 %1343 }
 0xac3   :  { %2299 = vrcp.f32 %v1344_v37 }
 0xac6   :  { %v1347_v38 = vpop.xlane.xlu0 %1346 }
 0xac7   :  { %2301 = vrcp.f32 %v1347_v38 }
 0xaca   :  { %v1353_v40 = vpop.permute.xlu0 %1352 }
 0xacb   :  { %2126 = vmatpush3.msra.mxu0 %v1353_v40 }
 0xacd   :  { %v2300_v42 = vpop.eup %2299 }
 0xace   :  { %v1350_v43 = vmul.f32 %v2300_v42, %v2296_v39  ;;  %v1515_v57 = vpop.permute.xlu0 %1514 }
 0xacf   :  { %v1531_v60 = vsel %vm1530_vm4, %v1528_v58, %v1515_v57  ;;  %v1829_v57 = vld [vmem:[%s2730_s11 + $0x48] sm:$0xff] }
 0xad0   :  { %2128 = vmatmul.mubr.msk.f32.vlgmr.msra.gmra.mrb[12].mxu0 %vm188_vm2, %v1350_v43  ;;  %v2232_v58 = vpack.c.bf16 %v1829_v57, %v1828_v56 }
 0xad1   :  { %v2302_v44 = vpop.eup %2301 }
 0xad2   :  { %v1351_v45 = vmul.f32 %v2302_v44, %v2298_v32 }
 0xad4   :  { %2133 = vmatmul.mubr.msk.f32.vlgmr.msra.gmra.mrb[18].mxu1 %vm188_vm2, %v1351_v45  ;;  %v1820_v45 = vld [vmem:[%s2730_s11] sm:$0xff] }
 0xad5   :  { %2203 = vmatpush3.bf16.msra.mxu1 %v2200_v47  ;;  %v2216_v41 = vpack.c.bf16 %v1821_v46, %v1820_v45  ;;  %v1822_v47 = vld [vmem:[%s2730_s11 + $0x10] sm:$0xff] }
 0xad6   :  { %2205 = vmatprep.subr.bf16.mxu1 %v2204_v50  ;;  %v2220_v49 = vpack.c.bf16 %v1823_v48, %v1822_v47 }
 0xad7   :  { %2217 = vmatprep.subr.bf16.mxu0 %v2216_v41 }
 0xad8   :  { %2219 = vmatpush3.bf16.msra.mxu0 %v2216_v41 }
 0xad9   :  { %2207 = vmatpush3.bf16.msra.mxu1 %v2204_v50  ;;  %2221 = vmatprep.subr.bf16.mxu0 %v2220_v49  ;;  %v1824_v50 = vld [vmem:[%s2730_s11 + $0x20] sm:$0xff] }
 0xadc   :  { %2223 = vmatpush3.bf16.msra.mxu0 %v2220_v49 }
 0xba3   :  { %v1424_v51 = vpop.f32.mrb[12].mxu0 }
 0xba4   :  { %1522 = vrot.lane.b32.xlu0 %v1424_v51, %s2354_s2  ;;  %v2129_v52 = vpop.f32.mrb[13].mxu0  ;;  %v1825_v51 = vld [vmem:[%s2730_s11 + $0x28] sm:$0xff] }
 0xba5   :  { %v2224_v52 = vpack.c.bf16 %v1825_v51, %v1824_v50  ;;  %v2355_v50 = vmov -1.0  }
 0xba7   :  { %v1500_v53 = vpop.f32.mrb[18].mxu1  ;;  %2225 = vmatprep.subr.bf16.mxu0 %v2224_v52 }
 0xba8   :  { %1524 = vrot.lane.b32.xlu1 %v1500_v53, %s2354_s2  ;;  %v2134_v54 = vpop.f32.mrb[19].mxu1  ;;  %2227 = vmatpush3.bf16.msra.mxu0 %v2224_v52  ;;  %v1826_v53 = vld [vmem:[%s2730_s11 + $0x30] sm:$0xff] }
 0xba9   :  { %v1827_v54 = vld [vmem:[%s2730_s11 + $0x38] sm:$0xff] }
 0xbaa   :  { %v2228_v55 = vpack.c.bf16 %v1827_v54, %v1826_v53 }
 0xbac   :  { %2229 = vmatprep.subr.bf16.mxu0 %v2228_v55 }
 0xbad   :  { %2231 = vmatpush3.bf16.msra.mxu0 %v2228_v55 }
 0xbae   :  { %2233 = vmatprep.subr.bf16.mxu0 %v2232_v58 }
 0xbb1   :  { %2235 = vmatpush3.bf16.msra.mxu0 %v2232_v58 }
 0xc16   :  { %v1523_v61 = vpop.permute.xlu0 %1522 }
 0xc17   :  { %v1534_v62 = vsel %vm1533_vm3, %v1531_v60, %v1523_v61  ;;  %v1831_v60 = vld [vmem:[%s2730_s11 + $0x58] sm:$0xff] }
 0xc18   :  { %2143 = vmatprep.mubr.msk.f32.mxu1 %vm49_vm0, %v1534_v62  ;;  %v2236_v61 = vpack.c.bf16 %v1831_v60, %v1830_v59  ;;  %v1832_v62 = vld [vmem:[%s2730_s11 + $0x60] sm:$0xff] }
 0xc1a   :  { %v1525_v1 = vpop.permute.xlu1 %1524  ;;  %2237 = vmatprep.subr.bf16.mxu0 %v2236_v61 }
 0xc1b   :  { %v1535_v2 = vsel %vm1533_vm3, %v1532_v0, %v1525_v1  ;;  %2239 = vmatpush3.bf16.msra.mxu0 %v2236_v61  ;;  %v2240_v0 = vpack.c.bf16 %v1833_v63, %v1832_v62  ;;  %v1834_v1 = vld [vmem:[%s2730_s11 + $0x70] sm:$0xff]  ;;  %v1975_v62 = vld [vmem:[%s2731_s12] ss:$0 sm:$0xff] }
 0xc1c   :  { %2144 = vmatmul.mubr.msk.f32.vlgmr.msra.gmra.mrb[20].mxu1 %vm49_vm0, %v1535_v2  ;;  %v1835_v2 = vld [vmem:[%s2730_s11 + $0x78] sm:$0xff] }
 0xc1d   :  { %2241 = vmatprep.subr.bf16.mxu0 %v2240_v0 }
 0xc1f   :  { %2243 = vmatpush3.bf16.msra.mxu0 %v2240_v0 }
 0xcef   :  { %v2145_v8 = vpop.f32.mrb[20].mxu1 }
 0xcf0   :  { %v1625_v4 = vadd.f32 %v2145_v8, %v1967_v3  ;;  %v1619_v5 = vpop.f32.mrb[21].mxu1  ;;  %v1972_v8 = vld [vmem:[%s2729_s10] ss:$0 sm:$0xff] }
 0xcf1   :  { %v1620_v6 = vadd.f32 %v1967_v3, %v1619_v5  ;;  %v2244_v3 = vpack.c.bf16 %v1835_v2, %v1834_v1 }
 0xcf2   :  { %v1629_v7 = vadd.f32 %v1625_v4, %v2460_v35 }
 0xcf3   :  { %v1628_v9 = vadd.f32 %v1620_v6, %v2456_v33  ;;  %v1674_v33 = vld [vmem:[%s2728_s9] sm:$0xff]  ;;  %2245 = vmatprep.subr.bf16.mxu0 %v2244_v3 }
 0xcf4   :  { %v1635_v11 = vsel %vm49_vm0, %v1629_v7, 0.0  ;;  %v2208_v22 = vpack.c.bf16 %v1675_v21, %v1674_v33  ;;  %2247 = vmatpush3.bf16.msra.mxu0 %v2244_v3 }
 0xcf5   :  { %1636 = vadd.xlane.f32.xlu1 %v1635_v11  ;;  %v1632_v10 = vsel %vm49_vm0, %v1628_v9, 0.0 }
 0xcf6   :  { %1633 = vadd.xlane.f32.xlu0 %v1632_v10  ;;  %2209 = vmatprep.subr.bf16.mxu1 %v2208_v22 }
 0xcf7   :  { %2211 = vmatpush3.bf16.msra.mxu1 %v2208_v22 }
 0xcf8   :  { %2213 = vmatprep.subr.bf16.mxu1 %v2212_v36 }
 0xcfb   :  { %2215 = vmatpush3.bf16.msra.mxu1 %v2212_v36 }
 0xd82   :  { %v1637_v12 = vpop.xlane.xlu1 %1636 }
 0xd83   :  { %v1639_v13 = vmul.f32 0.03125, %v1637_v12  ;;  %v1634_v14 = vpop.xlane.xlu0 %1633 }
 0xd84   :  { %v1638_v15 = vmul.f32 0.03125, %v1634_v14 }
 0xd85   :  { %v1641_v16 = vsub.f32 %v1629_v7, %v1639_v13 }
 0xd86   :  { %v1640_v17 = vsub.f32 %v1628_v9, %v1638_v15 }
 0xd87   :  { %v1643_v20 = vmul.f32 %v1641_v16, %v1641_v16 }
 0xd88   :  { %v1642_v18 = vmul.f32 %v1640_v17, %v1640_v17 }
 0xd89   :  { %v1647_v35 = vsel %vm49_vm0, %v1643_v20, 0.0 }
 0xd8a   :  { %v1644_v19 = vsel %vm49_vm0, %v1642_v18, 0.0 }
 0xd8b   :  { %1645 = vadd.xlane.f32.xlu0 %v1644_v19 }
 0xd8f   :  { %1648 = vadd.xlane.f32.xlu0 %v1647_v35 }
 0xe18   :  { %v1646_v25 = vpop.xlane.xlu0 %1645 }
 0xe19   :  { %v1650_v26 = vmul.f32 0.03125, %v1646_v25 }
 0xe1b   :  { %v1652_v27 = vadd.f32 1e-05, %v1650_v26 }
 0xe1c   :  { %v1649_v28 = vpop.xlane.xlu0 %1648 }
 0xe1d   :  { %2303 = vrsqrt.f32 %v1652_v27  ;;  %v1651_v29 = vmul.f32 0.03125, %v1649_v28 }
 0xe1f   :  { %v1653_v30 = vadd.f32 1e-05, %v1651_v29 }
 0xe21   :  { %2305 = vrsqrt.f32 %v1653_v30 }
 0xe27   :  { %v2304_v39 = vpop.eup %2303 }
 0xe28   :  { %v1656_v32 = vmul.f32 %v2304_v39, %v1640_v17 }
 0xe2a   :  { %v1664_v37 = vmul.f32 %v1970_v31, %v1656_v32 }
 0xe2b   :  { %v2306_v38 = vpop.eup %2305 }
 0xe2c   :  { %v1657_v40 = vmul.f32 %v2306_v38, %v1641_v16  ;;  %v2640_v42 = vadd.f32 %v1971_v34, %v1664_v37 }
 0xe2e   :  { %v1665_v43 = vmul.f32 %v1970_v31, %v1657_v40  ;;  %2154 = vmatprep.mubr.msk.f32.mxu1 %vm49_vm0, %v2640_v42 }
 0xe30   :  { %v2644_v44 = vadd.f32 %v1971_v34, %v1665_v43 }
 0xe32   :  { %2155 = vmatmul.mubr.msk.f32.vlgmr.msra.gmra.mrb[22].mxu1 %vm49_vm0, %v2644_v44 }
 0xf05   :  { %v2156_v4 = vpop.f32.mrb[22].mxu1 }
 0xf06   :  { %v1763_v5 = vadd.f32 %v2156_v4, %v1972_v8  ;;  %v1757_v6 = vpop.f32.mrb[23].mxu1 }
 0xf07   :  { %v1758_v7 = vadd.f32 %v1972_v8, %v1757_v6 }
 0xf08   :  { %v1769_v9 = vmul.f32 0.70710677, %v1763_v5  ;;  %v1767_v59 = vmul.f32 0.5, %v1763_v5 }
 0xf09   :  { %v1768_v11 = vmul.f32 0.70710677, %v1758_v7  ;;  %v1766_v57 = vmul.f32 0.5, %v1758_v7 }
 0xf0a   :  { %v1775_v10 = vand.u32 2147483647, %v1769_v9  ;;  %vm1771_vm5 = vcmp.ge.f32.partialorder %v1769_v9, 0.0 }
 0xf0b   :  { %v1774_v12 = vand.u32 2147483647, %v1768_v11  ;;  %vm1770_vm6 = vcmp.ge.f32.partialorder %v1768_v11, 0.0  ;;  %v1773_v51 = vsel %vm1771_vm5, 1.0, %v2355_v50 }
 0xf0c   :  { %v1777_v13 = vmul.f32 0.3275911, %v1775_v10  ;;  %v1803_v17 = vsub.f32 0.0, %v1775_v10  ;;  %v1772_v54 = vsel %vm1770_vm6, 1.0, %v2355_v50 }
 0xf0d   :  { %v1776_v14 = vmul.f32 0.3275911, %v1774_v12  ;;  %v1802_v18 = vsub.f32 0.0, %v1774_v12 }
 0xf0e   :  { %v1779_v15 = vadd.f32 1.0, %v1777_v13  ;;  %v1805_v20 = vmul.f32 %v1803_v17, %v1775_v10 }
 0xf0f   :  { %v1778_v16 = vadd.f32 1.0, %v1776_v14  ;;  %v1804_v21 = vmul.f32 %v1802_v18, %v1774_v12 }
 0xf10   :  { %2307 = vrcp.f32 %v1779_v15  ;;  %v1808_v24 = vmul.f32 1.442695, %v1805_v20 }
 0xf11   :  { %2309 = vrcp.f32 %v1778_v16  ;;  %v1806_v26 = vmul.f32 1.442695, %v1804_v21 }
 0xf12   :  { %2311 = vpow2.f32 %v1808_v24 }
 0xf13   :  { %2313 = vpow2.f32 %v1806_v26 }
 0xf1a   :  { %v2308_v19 = vpop.eup %2307 }
 0xf1b   :  { %v2310_v35 = vpop.eup %2309  ;;  %v1785_v33 = vmul.f32 1.0614054, %v2308_v19 }
 0xf1c   :  { %v1784_v22 = vmul.f32 1.0614054, %v2310_v35  ;;  %v2312_v45 = vpop.eup %2311 }
 0xf1d   :  { %v1787_v23 = vadd.f32 -1.4531521, %v1785_v33  ;;  %v2314_v41 = vpop.eup %2313 }
 0xf1e   :  { %v1786_v36 = vadd.f32 -1.4531521, %v1784_v22 }
 0xf1f   :  { %v1789_v25 = vmul.f32 %v2308_v19, %v1787_v23 }
 0xf20   :  { %v1788_v27 = vmul.f32 %v2310_v35, %v1786_v36 }
 0xf21   :  { %v1791_v28 = vadd.f32 1.4214138, %v1789_v25 }
 0xf22   :  { %v1790_v29 = vadd.f32 1.4214138, %v1788_v27 }
 0xf23   :  { %v1793_v30 = vmul.f32 %v2308_v19, %v1791_v28 }
 0xf24   :  { %v1792_v39 = vmul.f32 %v2310_v35, %v1790_v29 }
 0xf25   :  { %v1795_v31 = vadd.f32 -0.28449672, %v1793_v30 }
 0xf26   :  { %v1794_v32 = vadd.f32 -0.28449672, %v1792_v39 }
 0xf27   :  { %v1797_v34 = vmul.f32 %v2308_v19, %v1795_v31 }
 0xf28   :  { %v1796_v37 = vmul.f32 %v2310_v35, %v1794_v32 }
 0xf29   :  { %v1799_v38 = vadd.f32 0.2548296, %v1797_v34 }
 0xf2a   :  { %v1798_v40 = vadd.f32 0.2548296, %v1796_v37 }
 0xf2b   :  { %v1801_v43 = vmul.f32 %v2308_v19, %v1799_v38 }
 0xf2c   :  { %v1800_v46 = vmul.f32 %v2310_v35, %v1798_v40 }
 0xf2d   :  { %v1811_v47 = vmul.f32 %v2312_v45, %v1801_v43 }
 0xf2e   :  { %v1810_v48 = vmul.f32 %v2314_v41, %v1800_v46 }
 0xf2f   :  { %v1813_v49 = vsub.f32 1.0, %v1811_v47 }
 0xf30   :  { %v1812_v52 = vsub.f32 1.0, %v1810_v48 }
 0xf31   :  { %v1815_v53 = vmul.f32 %v1813_v49, %v1773_v51 }
 0xf32   :  { %v1814_v55 = vmul.f32 %v1812_v52, %v1772_v54 }
 0xf33   :  { %v1817_v56 = vadd.f32 1.0, %v1815_v53 }
 0xf34   :  { %v1816_v58 = vadd.f32 1.0, %v1814_v55 }
 0xf35   :  { %v1819_v61 = vmul.f32 %v1817_v56, %v1767_v59 }
 0xf36   :  { %v1818_v60 = vmul.f32 %v1816_v58, %v1766_v57 }
 0xf38   :  { %2189 = vmatprep.mubr.f32.mxu0 %v1818_v60 }
 0xf39   :  { %2190 = vmatmul.mubr.f32.vlgmr.msra.gmra.mrb[14].mxu0 %v1819_v61 }
0x100c   :  { %v2191_v63 = vpop.f32.mrb[14].mxu0 }
0x100d   :  { %v1915_v0 = vadd.f32 %v2191_v63, %v1975_v62  ;;  %v1909_v1 = vpop.f32.mrb[15].mxu0 }
0x100e   :  { %v1910_v2 = vadd.f32 %v1975_v62, %v1909_v1 }
0x100f   :  { %v1919_v3 = vadd.f32 %v1915_v0, %v2644_v44 }
0x1010   :  { %v1918_v8 = vadd.f32 %v1910_v2, %v2640_v42 }
0x1011   :  { %1921 = vst.msk [vmem:[#allocation2 + $0x8] sm:$0xff] %vm49_vm0, %v1919_v3 }
0x1012   :  { %1920 = vst.msk [vmem:[#allocation2] sm:$0xff] %vm49_vm0, %v1918_v8 }
0x1013   :  { %2326 = shalt.err (!%p2323_p4)
}
0x1014   :  { %s2327_s5 = scalar_lea.hbm %s2732_s13, 256 }
0x1015   :  { %p2328_p5 = scmp.ne.s32.totalorder %s2732_s13, %s2327_s5  ;;  %p2331_p6 = scmp.lt.u32.totalorder %s2327_s5, %s2732_s13 }
0x1017   :  { %p2333_p7 = pnand %p2331_p6, %p2328_p5 }
0x1019   :  { %2336 = shalt.err (!%p2333_p7)
}
0x101a   :  { %s2357_s24 = smov 128  }
0x101b   :  { %1933 = dma.vmem_to_hbm [thread:$0]  %s1928_s21, 256, %s2732_s13, [#allocation3], %s2357_s24, %s2357_s24, %s2352_s14  }
0x101c   :  { %2337 = dma.done.wait [#allocation3], 256  }
0x101d   :  { %2338 = vsyncadd [#allocation3], 4294967040 }
0x101e   :  { %1937 = vsyncpa [#allocation3], 1 }

</bundles_post_ra>
